<compile_context>
chip_gen: v7x
topology: tpu7x:2x2x1
jax: 0.10.0
libtpu: 0.0.40
codegen_flags: <defaults>
</compile_context>

<pallas_src>
import functools

import numpy as np
import jax
import jax.numpy as jnp
from jax.experimental import pallas as pl
from jax.experimental.pallas import tpu as pltpu


# ----------------------------------------------------------------------------
# Fused Pallas kernel (one grid step = one batch element / stage)
# ----------------------------------------------------------------------------
def _fused_decoder_kernel(alpha_ref, x_ref, w2d_ref, b2d_ref, foldT_ref,
                          wog_ref, bog_ref, wm_ref, mix_ref, wd_ref, o_ref,
                          *, n_src, bn, in_chan, nf, kernel_size, stride):
    # alpha_ref: SMEM (1,)                       PReLU slope
    # x_ref    : (1, P, bn)      channels-last LSTM output, positions p = l*cs + k
    # w2d_ref  : (bn, n_src*bn)  1x1 Conv2d weight (transposed), bf16
    # b2d_ref  : (1, n_src*bn)   f32
    # foldT_ref: (nf, P)         0/1 fold (overlap-add) matrix, transposed, bf16
    # wog_ref  : (n_src*bn, 2*n_src*bn) block-diag [out | gate] weights, bf16
    # bog_ref  : (1, 2*n_src*bn) f32
    # wm_ref   : (n_src*bn, n_src*in_chan) block-diag mask conv weight, bf16
    # mix_ref  : (1, nf, in_chan) encoder output, channels-last, f32
    # wd_ref   : (in_chan, K)    ConvTranspose1d filterbank, bf16
    # o_ref    : (1, n_src, n_blocks, stride) blocked waveform (row-major == T)
    f32 = jnp.float32
    a = alpha_ref[0]
    x = x_ref[0]                                                   # (P, bn)
    xp = jnp.where(x > 0, x, a * x)                                # PReLU

    # 1x1 Conv2d: bn -> n_src*bn  (channels on lanes)
    y = jnp.dot(xp, w2d_ref[...].astype(f32),
                preferred_element_type=f32) + b2d_ref[...]         # (P, n_src*bn)

    # fold (overlap-add over chunks) as a matmul with a 0/1 matrix
    folded = jnp.dot(foldT_ref[...].astype(f32), y,
                     preferred_element_type=f32)                   # (nf, n_src*bn)

    # fused out+gate 1x1 convs, block-diagonal over sources (no sublane concat)
    og = jnp.dot(folded, wog_ref[...].astype(f32),
                 preferred_element_type=f32) + bog_ref[...]        # (nf, 2*n_src*bn)
    C = n_src * bn
    h = jnp.tanh(og[:, :C]) * jax.nn.sigmoid(og[:, C:])            # (nf, n_src*bn)

    # mask conv (block-diag, no bias) + ReLU mask activation
    score = jnp.dot(h, wm_ref[...].astype(f32),
                    preferred_element_type=f32)                    # (nf, n_src*in_chan)
    est_mask = jnp.maximum(score, 0.0)

    mix = mix_ref[0]                                               # (nf, in_chan)
    wd = wd_ref[...].astype(f32)                                   # (in_chan, K)
    r = kernel_size // stride
    n_blocks = nf + r - 1

    # ConvTranspose1d (free decoder, no bias): dense filterbank matmul per
    # source, then the overlap-add done fully in registers (r shifted,
    # zero-padded copies summed) -> single full-block store.
    wav_per_src = []
    for s in range(n_src):
        src_w = est_mask[:, s * in_chan:(s + 1) * in_chan] * mix   # (nf, in_chan)
        contrib = jnp.dot(src_w, wd, preferred_element_type=f32)   # (nf, K)
        wav_blk = None
        for j in range(r):
            seg = contrib[:, j * stride:(j + 1) * stride]          # (nf, stride)
            parts = []
            if j > 0:
                parts.append(jnp.zeros((j, stride), f32))
            parts.append(seg)
            if r - 1 - j > 0:
                parts.append(jnp.zeros((r - 1 - j, stride), f32))
            shifted = parts[0] if len(parts) == 1 else jnp.concatenate(parts, axis=0)
            wav_blk = shifted if wav_blk is None else wav_blk + shifted
        wav_per_src.append(wav_blk)                                # (n_blocks, stride)

    o_ref[...] = jnp.stack(wav_per_src, axis=0)[None]              # (1, n_src, n_blocks, stride)


# ----------------------------------------------------------------------------
# One-time parameter packing (hoisted off the forward latency path)
# ----------------------------------------------------------------------------
def pack_decoder_params(params, *, n_src, bn_chan, in_chan):
    wdt = jnp.bfloat16
    C = n_src * bn_chan
    w_out = np.asarray(params["w_out"], np.float32)                # (bn, bn)  (out, in)
    w_gate = np.asarray(params["w_gate"], np.float32)              # (bn, bn)
    w_mask = np.asarray(params["w_mask"], np.float32)              # (in_chan, bn)

    # block-diagonal [out | gate] and mask weights, channels-last orientation
    w_og = np.zeros((C, 2 * C), np.float32)
    w_m = np.zeros((C, n_src * in_chan), np.float32)
    for s in range(n_src):
        rs = slice(s * bn_chan, (s + 1) * bn_chan)
        w_og[rs, s * bn_chan:(s + 1) * bn_chan] = w_out.T
        w_og[rs, C + s * bn_chan:C + (s + 1) * bn_chan] = w_gate.T
        w_m[rs, s * in_chan:(s + 1) * in_chan] = w_mask.T

    b_og = np.concatenate([np.tile(np.asarray(params["b_out"], np.float32), n_src),
                           np.tile(np.asarray(params["b_gate"], np.float32), n_src)])

    return {
        "alpha": jnp.reshape(jnp.asarray(params["prelu_alpha"], jnp.float32), (1,)),
        "w2d_T": jnp.asarray(np.asarray(params["w2d"], np.float32).T, wdt),     # (bn, n_src*bn)
        "b2d": jnp.asarray(params["b2d"], jnp.float32)[None, :],                # (1, n_src*bn)
        "w_og": jnp.asarray(w_og, wdt),                                         # (C, 2C)
        "b_og": jnp.asarray(b_og, jnp.float32)[None, :],                        # (1, 2C)
        "w_mask": jnp.asarray(w_m, wdt),                                        # (C, n_src*in_chan)
        "w_dec": jnp.asarray(np.asarray(params["w_dec"], np.float32)[:, 0, :], wdt),  # (in_chan, K)
    }


@functools.lru_cache(maxsize=None)
def _fold_matrix_T(n_chunks, chunk_size, hop_size, n_frames):
    # torch.nn.functional.fold with kernel=(cs,1), padding=(cs,0), stride=(hop,1)
    m = np.zeros((n_frames, n_chunks * chunk_size), np.float32)
    for l in range(n_chunks):
        for k in range(chunk_size):
            i = l * hop_size + k - chunk_size
            if 0 <= i < n_frames:
                m[i, l * chunk_size + k] = 1.0
    return jnp.asarray(m, jnp.bfloat16)          # 0/1 -> exact in bf16


# ----------------------------------------------------------------------------
# Forward wrapper
# ----------------------------------------------------------------------------
@functools.partial(jax.jit, static_argnames=("n_src", "chunk_size", "hop_size",
                                             "kernel_size", "stride"))
def single_decoder_forward(packed, output, mixture_w, *, n_src, chunk_size,
                           hop_size, kernel_size, stride):
    B, bn, cs, nc = output.shape
    _, in_chan, nf = mixture_w.shape
    assert cs == chunk_size
    # TODO(synk): kernel_size % stride != 0 would need a scatter-matrix transconv path.
    assert kernel_size % stride == 0
    P = nc * cs
    r = kernel_size // stride
    n_blocks = nf + r - 1
    T = n_blocks * stride                        # == (nf - 1) * stride + kernel_size

    # channels-last layouts; chunk-major positions p = l*cs + k
    # TODO(synk): emit channels-last directly from the upstream kernel to avoid
    # these HBM transposes.
    x_cl = jnp.transpose(output, (0, 3, 2, 1)).reshape(B, P, bn)
    mix_cl = jnp.transpose(mixture_w, (0, 2, 1))
    fold_T = _fold_matrix_T(nc, cs, hop_size, nf)                  # (nf, P)

    kernel = functools.partial(_fused_decoder_kernel, n_src=n_src, bn=bn,
                               in_chan=in_chan, nf=nf,
                               kernel_size=kernel_size, stride=stride)
    blocks = pl.pallas_call(
        kernel,
        out_shape=jax.ShapeDtypeStruct((B, n_src, n_blocks, stride), jnp.float32),
        grid=(B,),
        in_specs=[
            pl.BlockSpec(memory_space=pltpu.MemorySpace.SMEM),               # alpha
            pl.BlockSpec((1, P, bn), lambda b: (b, 0, 0)),                   # x
            pl.BlockSpec((bn, n_src * bn), lambda b: (0, 0)),                # w2d_T
            pl.BlockSpec((1, n_src * bn), lambda b: (0, 0)),                 # b2d
            pl.BlockSpec((nf, P), lambda b: (0, 0)),                         # fold_T
            pl.BlockSpec((n_src * bn, 2 * n_src * bn), lambda b: (0, 0)),    # w_og (block-diag)
            pl.BlockSpec((1, 2 * n_src * bn), lambda b: (0, 0)),             # b_og
            pl.BlockSpec((n_src * bn, n_src * in_chan), lambda b: (0, 0)),   # w_mask (block-diag)
            pl.BlockSpec((1, nf, in_chan), lambda b: (b, 0, 0)),             # mixture
            pl.BlockSpec((in_chan, kernel_size), lambda b: (0, 0)),          # wd
        ],
        out_specs=pl.BlockSpec((1, n_src, n_blocks, stride),
                               lambda b: (b, 0, 0, 0)),
        compiler_params=pltpu.CompilerParams(
            dimension_semantics=("parallel",)),
    )(packed["alpha"], x_cl, packed["w2d_T"], packed["b2d"], fold_T,
      packed["w_og"], packed["b_og"], packed["w_mask"], mix_cl, packed["w_dec"])

    # (n_blocks, stride) row-major flattens exactly to the length-T waveform (free reshape)
    return blocks.reshape(B, n_src, T)


# ----------------------------------------------------------------------------
# Pure-JAX reference (PyTorch semantics) for verification
# ----------------------------------------------------------------------------
def reference_forward(params, output, mixture_w, *, n_src, chunk_size,
                      hop_size, kernel_size, stride):
    P = jax.lax.Precision.HIGHEST
    B, bn, cs, nc = output.shape
    _, in_chan, nf = mixture_w.shape
    a = params["prelu_alpha"]
    x = jnp.where(output > 0, output, a * output)
    y = jnp.einsum("bchw,oc->bohw", x, params["w2d"], precision=P) \
        + params["b2d"][None, :, None, None]
    y = y.reshape(B * n_src, bn, cs, nc)
    padded = jnp.zeros((B * n_src, bn, nf + 2 * cs), jnp.float32)
    for l in range(nc):
        padded = padded.at[:, :, l * hop_size:l * hop_size + cs].add(y[:, :, :, l])
    folded = padded[:, :, cs:cs + nf]
    t = jnp.tanh(jnp.einsum("bcf,oc->bof", folded, params["w_out"], precision=P)
                 + params["b_out"][None, :, None])
    g = jax.nn.sigmoid(jnp.einsum("bcf,oc->bof", folded, params["w_gate"], precision=P)
                       + params["b_gate"][None, :, None])
    h = t * g
    score = jnp.einsum("bcf,oc->bof", h, params["w_mask"], precision=P)
    est_mask = jnp.maximum(score, 0.0).reshape(B, n_src, in_chan, nf)
    src = (est_mask * mixture_w[:, None]).reshape(B * n_src, in_chan, nf)
    T = (nf - 1) * stride + kernel_size
    wav = jnp.zeros((B * n_src, T), jnp.float32)
    wd = params["w_dec"][:, 0, :]                                  # (in_chan, K)
    for f in range(nf):
        contrib = jnp.einsum("bc,ck->bk", src[:, :, f], wd, precision=P)
        wav = wav.at[:, f * stride:f * stride + kernel_size].add(contrib)
    return wav.reshape(B, n_src, T)


# ----------------------------------------------------------------------------
if __name__ == "__main__":
    # Small, mutually-consistent shapes
    B = 2              # num_stages ("batch" in forward)
    bn_chan = 16
    in_chan = 32
    n_src = 2
    chunk_size = 8
    hop_size = 4
    kernel_size = 16
    stride = 8
    n_frames = 16
    n_chunks = (n_frames + 2 * chunk_size - chunk_size) // hop_size + 1   # = 7

    key = jax.random.PRNGKey(0)
    ks = jax.random.split(key, 10)
    params = {
        "prelu_alpha": jnp.array(0.25, jnp.float32),
        "w2d": 0.1 * jax.random.normal(ks[0], (n_src * bn_chan, bn_chan), jnp.float32),
        "b2d": 0.1 * jax.random.normal(ks[1], (n_src * bn_chan,), jnp.float32),
        "w_out": 0.1 * jax.random.normal(ks[2], (bn_chan, bn_chan), jnp.float32),
        "b_out": 0.1 * jax.random.normal(ks[3], (bn_chan,), jnp.float32),
        "w_gate": 0.1 * jax.random.normal(ks[4], (bn_chan, bn_chan), jnp.float32),
        "b_gate": 0.1 * jax.random.normal(ks[5], (bn_chan,), jnp.float32),
        "w_mask": 0.1 * jax.random.normal(ks[6], (in_chan, bn_chan), jnp.float32),
        "w_dec": 0.1 * jax.random.normal(ks[7], (in_chan, 1, kernel_size), jnp.float32),
    }
    # Snap parameters to bf16-representable values so the kernel's bf16 weight
    # storage is lossless and the f32 reference matches to float32 accuracy.
    snap = lambda a: jnp.asarray(a, jnp.float32).astype(jnp.bfloat16).astype(jnp.float32)
    params = {k: snap(v) for k, v in params.items()}

    # Inputs (PyTorch layouts): output (B, bn, chunk, n_chunks), mixture (B, in_chan, nf)
    output = jax.random.normal(ks[8], (B, bn_chan, chunk_size, n_chunks), jnp.float32)
    mixture_w = jax.random.normal(ks[9], (B, in_chan, n_frames), jnp.float32)

    cfg = dict(n_src=n_src, chunk_size=chunk_size, hop_size=hop_size,
               kernel_size=kernel_size, stride=stride)

    packed = pack_decoder_params(params, n_src=n_src, bn_chan=bn_chan, in_chan=in_chan)
    est_wavs = single_decoder_forward(packed, output, mixture_w, **cfg)
    est_wavs = jax.block_until_ready(est_wavs)

    ref = jax.block_until_ready(reference_forward(params, output, mixture_w, **cfg))

    expected_T = (n_frames - 1) * stride + kernel_size
    assert est_wavs.shape == (B, n_src, expected_T), est_wavs.shape
    np.testing.assert_allclose(np.asarray(est_wavs), np.asarray(ref),
                               rtol=2e-3, atol=2e-3)
    print("KERNEL_OK")
</pallas_src>

<mosaic_0001>
module attributes {stable_mosaic.version = 11 : i64} {
  func.func @_fused_decoder_kernel(%arg0: i32, %arg1: memref<1xf32, #tpu.memory_space<smem>>, %arg2: memref<1x56x16xf32, #tpu.memory_space<vmem>>, %arg3: memref<16x32xbf16, #tpu.memory_space<vmem>>, %arg4: memref<1x32xf32, #tpu.memory_space<vmem>>, %arg5: memref<16x56xbf16, #tpu.memory_space<vmem>>, %arg6: memref<32x64xbf16, #tpu.memory_space<vmem>>, %arg7: memref<1x64xf32, #tpu.memory_space<vmem>>, %arg8: memref<32x64xbf16, #tpu.memory_space<vmem>>, %arg9: memref<1x16x32xf32, #tpu.memory_space<vmem>>, %arg10: memref<32x16xbf16, #tpu.memory_space<vmem>>, %arg11: memref<1x2x17x8xf32, #tpu.memory_space<vmem>>) attributes {dimension_semantics = [#tpu.dimension_semantics<parallel>], iteration_bounds = array<i64: 2>, scalar_prefetch = 0 : i64, scratch_operands = 0 : i64, tpu.core_type = #tpu.core_type<tc>, window_params = [{transform_indices = @transform_0, window_bounds = array<i64: 1>}, {transform_indices = @transform_1, window_bounds = array<i64: 1, 56, 16>}, {pipeline_mode = #tpu.pipeline_mode<synchronous>, transform_indices = @transform_2, window_bounds = array<i64: 16, 32>}, {pipeline_mode = #tpu.pipeline_mode<synchronous>, transform_indices = @transform_3, window_bounds = array<i64: 1, 32>}, {pipeline_mode = #tpu.pipeline_mode<synchronous>, transform_indices = @transform_4, window_bounds = array<i64: 16, 56>}, {pipeline_mode = #tpu.pipeline_mode<synchronous>, transform_indices = @transform_5, window_bounds = array<i64: 32, 64>}, {pipeline_mode = #tpu.pipeline_mode<synchronous>, transform_indices = @transform_6, window_bounds = array<i64: 1, 64>}, {pipeline_mode = #tpu.pipeline_mode<synchronous>, transform_indices = @transform_7, window_bounds = array<i64: 32, 64>}, {transform_indices = @transform_8, window_bounds = array<i64: 1, 16, 32>}, {pipeline_mode = #tpu.pipeline_mode<synchronous>, transform_indices = @transform_9, window_bounds = array<i64: 32, 16>}, {transform_indices = @transform_10, window_bounds = array<i64: 1, 2, 17, 8>}]} {
    %c0 = arith.constant 0 : index
    %0 = memref.load %arg1[%c0] : memref<1xf32, #tpu.memory_space<smem>>
    %c0_0 = arith.constant 0 : index
    %c0_1 = arith.constant 0 : index
    %c0_2 = arith.constant 0 : index
    %1 = vector.load %arg2[%c0_0, %c0_1, %c0_2] : memref<1x56x16xf32, #tpu.memory_space<vmem>>, vector<1x56x16xf32>
    %2 = vector.shape_cast %1 : vector<1x56x16xf32> to vector<56x16xf32>
    %cst = arith.constant 0.000000e+00 : f32
    %3 = vector.broadcast %cst : f32 to vector<56x16xf32>
    %4 = arith.cmpf ogt, %2, %3 : vector<56x16xf32>
    %5 = vector.broadcast %0 : f32 to vector<56x16xf32>
    %6 = arith.mulf %5, %2 : vector<56x16xf32>
    %7 = arith.select %4, %2, %6 : vector<56x16xi1>, vector<56x16xf32>
    %c0_3 = arith.constant 0 : index
    %c0_4 = arith.constant 0 : index
    %8 = vector.load %arg3[%c0_3, %c0_4] : memref<16x32xbf16, #tpu.memory_space<vmem>>, vector<16x32xbf16>
    %9 = arith.extf %8 : vector<16x32xbf16> to vector<16x32xf32>
    %cst_5 = arith.constant dense<0.000000e+00> : vector<56x32xf32>
    %10 = tpu.matmul %7, %9, %cst_5 {dimension_numbers = #tpu.dot_dimension_numbers<[1], [0], [0], [1], [0, 0, 1, 1], [], []>} : vector<56x16xf32>, vector<16x32xf32>, vector<56x32xf32> -> vector<56x32xf32>
    %c0_6 = arith.constant 0 : index
    %c0_7 = arith.constant 0 : index
    %11 = vector.load %arg4[%c0_6, %c0_7] : memref<1x32xf32, #tpu.memory_space<vmem>>, vector<1x32xf32>
    %12 = vector.broadcast %11 : vector<1x32xf32> to vector<56x32xf32>
    %13 = arith.addf %10, %12 : vector<56x32xf32>
    %c0_8 = arith.constant 0 : index
    %c0_9 = arith.constant 0 : index
    %14 = vector.load %arg5[%c0_8, %c0_9] : memref<16x56xbf16, #tpu.memory_space<vmem>>, vector<16x56xbf16>
    %15 = arith.extf %14 : vector<16x56xbf16> to vector<16x56xf32>
    %cst_10 = arith.constant dense<0.000000e+00> : vector<16x32xf32>
    %16 = tpu.matmul %15, %13, %cst_10 {dimension_numbers = #tpu.dot_dimension_numbers<[1], [0], [0], [1], [0, 0, 1, 1], [], []>} : vector<16x56xf32>, vector<56x32xf32>, vector<16x32xf32> -> vector<16x32xf32>
    %c0_11 = arith.constant 0 : index
    %c0_12 = arith.constant 0 : index
    %17 = vector.load %arg6[%c0_11, %c0_12] : memref<32x64xbf16, #tpu.memory_space<vmem>>, vector<32x64xbf16>
    %18 = arith.extf %17 : vector<32x64xbf16> to vector<32x64xf32>
    %cst_13 = arith.constant dense<0.000000e+00> : vector<16x64xf32>
    %19 = tpu.matmul %16, %18, %cst_13 {dimension_numbers = #tpu.dot_dimension_numbers<[1], [0], [0], [1], [0, 0, 1, 1], [], []>} : vector<16x32xf32>, vector<32x64xf32>, vector<16x64xf32> -> vector<16x64xf32>
    %c0_14 = arith.constant 0 : index
    %c0_15 = arith.constant 0 : index
    %20 = vector.load %arg7[%c0_14, %c0_15] : memref<1x64xf32, #tpu.memory_space<vmem>>, vector<1x64xf32>
    %21 = vector.broadcast %20 : vector<1x64xf32> to vector<16x64xf32>
    %22 = arith.addf %19, %21 : vector<16x64xf32>
    %23 = vector.extract_strided_slice %22 {offsets = [0, 0], sizes = [16, 32], strides = [1, 1]} : vector<16x64xf32> to vector<16x32xf32>
    %24 = math.tanh %23 : vector<16x32xf32>
    %25 = vector.extract_strided_slice %22 {offsets = [0, 32], sizes = [16, 32], strides = [1, 1]} : vector<16x64xf32> to vector<16x32xf32>
    %26 = arith.negf %25 : vector<16x32xf32>
    %27 = math.exp %26 : vector<16x32xf32>
    %cst_16 = arith.constant 1.000000e+00 : f32
    %28 = vector.broadcast %cst_16 : f32 to vector<16x32xf32>
    %29 = arith.addf %28, %27 : vector<16x32xf32>
    %30 = arith.divf %28, %29 : vector<16x32xf32>
    %31 = arith.mulf %24, %30 : vector<16x32xf32>
    %c0_17 = arith.constant 0 : index
    %c0_18 = arith.constant 0 : index
    %32 = vector.load %arg8[%c0_17, %c0_18] : memref<32x64xbf16, #tpu.memory_space<vmem>>, vector<32x64xbf16>
    %33 = arith.extf %32 : vector<32x64xbf16> to vector<32x64xf32>
    %cst_19 = arith.constant dense<0.000000e+00> : vector<16x64xf32>
    %34 = tpu.matmul %31, %33, %cst_19 {dimension_numbers = #tpu.dot_dimension_numbers<[1], [0], [0], [1], [0, 0, 1, 1], [], []>} : vector<16x32xf32>, vector<32x64xf32>, vector<16x64xf32> -> vector<16x64xf32>
    %cst_20 = arith.constant 0.000000e+00 : f32
    %35 = vector.broadcast %cst_20 : f32 to vector<16x64xf32>
    %36 = arith.maximumf %34, %35 : vector<16x64xf32>
    %c0_21 = arith.constant 0 : index
    %c0_22 = arith.constant 0 : index
    %c0_23 = arith.constant 0 : index
    %37 = vector.load %arg9[%c0_21, %c0_22, %c0_23] : memref<1x16x32xf32, #tpu.memory_space<vmem>>, vector<1x16x32xf32>
    %38 = vector.shape_cast %37 : vector<1x16x32xf32> to vector<16x32xf32>
    %c0_24 = arith.constant 0 : index
    %c0_25 = arith.constant 0 : index
    %39 = vector.load %arg10[%c0_24, %c0_25] : memref<32x16xbf16, #tpu.memory_space<vmem>>, vector<32x16xbf16>
    %40 = arith.extf %39 : vector<32x16xbf16> to vector<32x16xf32>
    %41 = vector.extract_strided_slice %36 {offsets = [0, 0], sizes = [16, 32], strides = [1, 1]} : vector<16x64xf32> to vector<16x32xf32>
    %42 = arith.mulf %41, %38 : vector<16x32xf32>
    %cst_26 = arith.constant dense<0.000000e+00> : vector<16x16xf32>
    %43 = tpu.matmul %42, %40, %cst_26 {dimension_numbers = #tpu.dot_dimension_numbers<[1], [0], [0], [1], [0, 0, 1, 1], [], []>} : vector<16x32xf32>, vector<32x16xf32>, vector<16x16xf32> -> vector<16x16xf32>
    %44 = vector.extract_strided_slice %43 {offsets = [0, 0], sizes = [16, 8], strides = [1, 1]} : vector<16x16xf32> to vector<16x8xf32>
    %cst_27 = arith.constant 0.000000e+00 : f32
    %45 = vector.broadcast %cst_27 : f32 to vector<1x8xf32>
    %46 = tpu.concatenate %44, %45 in 0 : vector<16x8xf32>, vector<1x8xf32> -> vector<17x8xf32>
    %47 = vector.extract_strided_slice %43 {offsets = [0, 8], sizes = [16, 8], strides = [1, 1]} : vector<16x16xf32> to vector<16x8xf32>
    %cst_28 = arith.constant 0.000000e+00 : f32
    %48 = vector.broadcast %cst_28 : f32 to vector<1x8xf32>
    %49 = tpu.concatenate %48, %47 in 0 : vector<1x8xf32>, vector<16x8xf32> -> vector<17x8xf32>
    %50 = arith.addf %46, %49 : vector<17x8xf32>
    %51 = vector.extract_strided_slice %36 {offsets = [0, 32], sizes = [16, 32], strides = [1, 1]} : vector<16x64xf32> to vector<16x32xf32>
    %52 = arith.mulf %51, %38 : vector<16x32xf32>
    %cst_29 = arith.constant dense<0.000000e+00> : vector<16x16xf32>
    %53 = tpu.matmul %52, %40, %cst_29 {dimension_numbers = #tpu.dot_dimension_numbers<[1], [0], [0], [1], [0, 0, 1, 1], [], []>} : vector<16x32xf32>, vector<32x16xf32>, vector<16x16xf32> -> vector<16x16xf32>
    %54 = vector.extract_strided_slice %53 {offsets = [0, 0], sizes = [16, 8], strides = [1, 1]} : vector<16x16xf32> to vector<16x8xf32>
    %cst_30 = arith.constant 0.000000e+00 : f32
    %55 = vector.broadcast %cst_30 : f32 to vector<1x8xf32>
    %56 = tpu.concatenate %54, %55 in 0 : vector<16x8xf32>, vector<1x8xf32> -> vector<17x8xf32>
    %57 = vector.extract_strided_slice %53 {offsets = [0, 8], sizes = [16, 8], strides = [1, 1]} : vector<16x16xf32> to vector<16x8xf32>
    %cst_31 = arith.constant 0.000000e+00 : f32
    %58 = vector.broadcast %cst_31 : f32 to vector<1x8xf32>
    %59 = tpu.concatenate %58, %57 in 0 : vector<1x8xf32>, vector<16x8xf32> -> vector<17x8xf32>
    %60 = arith.addf %56, %59 : vector<17x8xf32>
    %61 = vector.shape_cast %50 : vector<17x8xf32> to vector<1x17x8xf32>
    %62 = vector.shape_cast %60 : vector<17x8xf32> to vector<1x17x8xf32>
    %63 = tpu.concatenate %61, %62 in 0 : vector<1x17x8xf32>, vector<1x17x8xf32> -> vector<2x17x8xf32>
    %64 = vector.shape_cast %63 : vector<2x17x8xf32> to vector<1x2x17x8xf32>
    %c0_32 = arith.constant 0 : index
    %c0_33 = arith.constant 0 : index
    %c0_34 = arith.constant 0 : index
    %c0_35 = arith.constant 0 : index
    %65 = vector.load %arg11[%c0_32, %c0_33, %c0_34, %c0_35] : memref<1x2x17x8xf32, #tpu.memory_space<vmem>>, vector<1x2x17x8xf32>
    tpu.vector_store %arg11[%c0_32, %c0_33, %c0_34, %c0_35], %64 {strides = array<i32>} : memref<1x2x17x8xf32, #tpu.memory_space<vmem>>, vector<1x2x17x8xf32>,
    return
  }
  func.func @transform_0(%arg0: i32) -> i32 {
    %c0_i32 = arith.constant 0 : i32
    %c0_i32_0 = arith.constant 0 : i32
    return %c0_i32 : i32
  }
  func.func @transform_1(%arg0: i32) -> (i32, i32, i32) {
    %c0_i32 = arith.constant 0 : i32
    %c0_i32_0 = arith.constant 0 : i32
    %c0_i32_1 = arith.constant 0 : i32
    return %arg0, %c0_i32, %c0_i32_0 : i32, i32, i32
  }
  func.func @transform_2(%arg0: i32) -> (i32, i32) {
    %c0_i32 = arith.constant 0 : i32
    %c0_i32_0 = arith.constant 0 : i32
    %c0_i32_1 = arith.constant 0 : i32
    return %c0_i32, %c0_i32_0 : i32, i32
  }
  func.func @transform_3(%arg0: i32) -> (i32, i32) {
    %c0_i32 = arith.constant 0 : i32
    %c0_i32_0 = arith.constant 0 : i32
    %c0_i32_1 = arith.constant 0 : i32
    return %c0_i32, %c0_i32_0 : i32, i32
  }
  func.func @transform_4(%arg0: i32) -> (i32, i32) {
    %c0_i32 = arith.constant 0 : i32
    %c0_i32_0 = arith.constant 0 : i32
    %c0_i32_1 = arith.constant 0 : i32
    return %c0_i32, %c0_i32_0 : i32, i32
  }
  func.func @transform_5(%arg0: i32) -> (i32, i32) {
    %c0_i32 = arith.constant 0 : i32
    %c0_i32_0 = arith.constant 0 : i32
    %c0_i32_1 = arith.constant 0 : i32
    return %c0_i32, %c0_i32_0 : i32, i32
  }
  func.func @transform_6(%arg0: i32) -> (i32, i32) {
    %c0_i32 = arith.constant 0 : i32
    %c0_i32_0 = arith.constant 0 : i32
    %c0_i32_1 = arith.constant 0 : i32
    return %c0_i32, %c0_i32_0 : i32, i32
  }
  func.func @transform_7(%arg0: i32) -> (i32, i32) {
    %c0_i32 = arith.constant 0 : i32
    %c0_i32_0 = arith.constant 0 : i32
    %c0_i32_1 = arith.constant 0 : i32
    return %c0_i32, %c0_i32_0 : i32, i32
  }
  func.func @transform_8(%arg0: i32) -> (i32, i32, i32) {
    %c0_i32 = arith.constant 0 : i32
    %c0_i32_0 = arith.constant 0 : i32
    %c0_i32_1 = arith.constant 0 : i32
    return %arg0, %c0_i32, %c0_i32_0 : i32, i32, i32
  }
  func.func @transform_9(%arg0: i32) -> (i32, i32) {
    %c0_i32 = arith.constant 0 : i32
    %c0_i32_0 = arith.constant 0 : i32
    %c0_i32_1 = arith.constant 0 : i32
    return %c0_i32, %c0_i32_0 : i32, i32
  }
  func.func @transform_10(%arg0: i32) -> (i32, i32, i32, i32) {
    %c0_i32 = arith.constant 0 : i32
    %c0_i32_0 = arith.constant 0 : i32
    %c0_i32_1 = arith.constant 0 : i32
    %c0_i32_2 = arith.constant 0 : i32
    return %arg0, %c0_i32, %c0_i32_0, %c0_i32_1 : i32, i32, i32, i32
  }
}

</mosaic_0001>

<bundles_post_ra>
// kernel: single_decoder_forward.1
= control target key start
LH: loop header
LB: loop body
LE: loop exit
PB: predicated region body
PF: predicated region fallthrough
CT: control target
= control target key end

     0   :  { %s2001_s0 = inlined_call_operand.<no memory space> [shape: f32[1], index: 0, kind: input, shape index: {}]   ;;  %s2002_s1 = inlined_call_operand.hbm [shape: f32[2,56,16], index: 1, kind: input, shape index: {}]   ;;  %s2003_s2 = inlined_call_operand.hbm [shape: bf16[16,32], index: 2, kind: input, shape index: {}]   ;;  %s2004_s3 = inlined_call_operand.vmem [shape: f32[1,32], index: 3, kind: input, shape index: {}]   ;;  %s2005_s4 = inlined_call_operand.vmem [shape: bf16[16,56], index: 4, kind: input, shape index: {}]   ;;  %s2006_s5 = inlined_call_operand.vmem [shape: bf16[32,64], index: 5, kind: input, shape index: {}]   ;;  %s2007_s6 = inlined_call_operand.hbm [shape: f32[1,64], index: 6, kind: input, shape index: {}]   ;;  %s2008_s7 = inlined_call_operand.vmem [shape: bf16[32,64], index: 7, kind: input, shape index: {}]   ;;  %s2009_s8 = inlined_call_operand.vmem [shape: f32[2,16,32], index: 8, kind: input, shape index: {}]   ;;  %s2010_s9 = inlined_call_operand.vmem [shape: bf16[32,16], index: 9, kind: input, shape index: {}]   ;;  %s2011_s10 = inlined_call_operand.vmem [shape: f32[2,2,17,8], index: 10, kind: output, shape index: {}]  }
   0x1   :  { %15 = sst [smem:[#allocation2]] %s2001_s0 }
   0x2   :  { %16 = vsyncpa [#allocation4], 0 }
   0x3   :  { %18 = vsyncpa [#allocation4 + $0x1], 0 }
   0x4   :  { %19 = vsyncpa [#allocation6], 0  ;;  %s1749_s15 = smov 0   ;;  %s1751_s16 = smov 0  }
   0x5   :  { %s1753_s17 = smov 0   ;;  %s1755_s18 = smov 0  }
   0x6 LB: > { %s1768_s0 = sadd.s32 4294967295, %s1676_s18   ;;  %p66_p0 = scmp.ne.s32.totalorder %s1668_s16, %s1664_s15  ;;  %s1676_s18 = sphi %s1755_s18, %s2026_s18   ;;  %s1672_s17 = sphi %s1753_s17, %s2025_s17   ;;  %s1668_s16 = sphi %s1751_s16, %s2024_s16   ;;  %s1664_s15 = sphi %s1749_s15, %s2023_s15  }
   0x7   : > { %p2012_p1 = scmp.eq.s32.totalorder %s1768_s0, 0  ;;  %p1221_p2 = scmp.ge.s32.totalorder %s1676_s18, 1 }
   0x8   : > { %p276_p3 = scmp.lt.s32.totalorder %s1676_s18, 3  ;;  %s1678_s21 = smov [#allocation5]  }
   0x9   : > { %p1776_p4 = por %p2012_p1, %p66_p0  ;;  %s291_s22 = sshll.u32 %s1678_s21, 4  ;;  %s292_s22 = int_to_ptr.vmem [resolvable:$true] %s291_s22 }
   0xa   : > { %p1780_p5 = pnand %p1221_p2, %p276_p3  ;;  %s1679_s24 = smov [#allocation7]  }
   0xb   : > { %s2015_s19 = scalar_select %p1776_p4, 1, 0 }
   0xc   : > { %s2016_s20 = scalar_select %p1780_p5, 1, 0 }
   0xd   : > { %p1480_p6 = pneg %p1780_p5  ;;  %s314_s25 = sshll.u32 %s1679_s24, 4  ;;  %s1792_s25 = int_to_ptr.vmem [resolvable:$true] %s314_s25 }
   0xe   : > { %s1552_s28 = scalar_lea.hbm %s2003_s2, 128 }
   0xf   : > { %p1788_p7 = pnand %p1480_p6, %p2012_p1  ;;  %p1553_p8 = scmp.ne.s32.totalorder %s2003_s2, %s1552_s28 }
  0x10   : > { %p1559_p12 = scmp.lt.u32.totalorder %s1552_s28, %s2003_s2 }
  0x11   : > { %p1554_p9 = pneg %p1788_p7 }
  0x13   : > { %p1555_p10 = pnand %p1554_p9, %p1553_p8 }
  0x15   : > { %p1556_p11 = pneg %p1555_p10 }
  0x17   : > { %p1561_p13 = pnand %p1559_p12, %p1556_p11 }
  0x19   : > { %1564 = shalt.err (!%p1561_p13)
}
  0x1a   : > { %s1565_s13 = scalar_lea.vmem %s292_s22, 128  ;;  %p1573_p6 = scmp.lt.s32.totalorder %s292_s22, %s292_s22 }
  0x1b   : > { %p1566_p0 = scmp.ne.s32.totalorder %s292_s22, %s1565_s13  ;;  %p1574_p1 = scmp.lt.s32.totalorder %s1565_s13, %s1565_s13 }
  0x1d   : > { %p1568_p2 = pnand %p1566_p0, %p1554_p9  ;;  %p1575_p4 = por %p1574_p1, %p1573_p6 }
  0x1f   : > { %p1569_p3 = pneg %p1568_p2 }
  0x21   : > { %p1576_p5 = pnand %p1575_p4, %p1569_p3 }
  0x23   : > { %1579 = shalt.err (!%p1576_p5)
}
  0x24   : > { %s1680_s14 = smov 64   ;;  %s1681_s15 = smov 4  }
  0x25   : > { %1483 = dma.hbm_to_vmem [thread:$0]  (!%p1788_p7), %s2003_s2, 128, %s292_s22, [#allocation6], %s1680_s14, %s1680_s14, %s1681_s15  }
  0x26   : > { %s1580_s28 = scalar_lea.hbm %s2007_s6, 16 }
  0x27   : > { %p1581_p8 = scmp.ne.s32.totalorder %s2007_s6, %s1580_s28  ;;  %p1587_p5 = scmp.lt.u32.totalorder %s1580_s28, %s2007_s6 }
  0x29   : > { %p1583_p1 = pnand %p1581_p8, %p1554_p9 }
  0x2b   : > { %p1584_p4 = pneg %p1583_p1 }
  0x2d   : > { %p1589_p10 = pnand %p1587_p5, %p1584_p4 }
  0x2f   : > { %1592 = shalt.err (!%p1589_p10)
}
  0x30   : > { %s1593_s22 = scalar_lea.vmem %s1792_s25, 16  ;;  %s1600_s13 = scalar_lea.vmem %s1792_s25, 32 }
  0x31   : > { %p1594_p11 = scmp.ne.s32.totalorder %s1792_s25, %s1593_s22  ;;  %p1601_p0 = scmp.lt.s32.totalorder %s1792_s25, %s1792_s25 }
  0x32   : > { %p1602_p2 = scmp.lt.s32.totalorder %s1600_s13, %s1593_s22 }
  0x33   : > { %p1596_p12 = pnand %p1594_p11, %p1554_p9 }
  0x34   : > { %p1603_p3 = por %p1602_p2, %p1601_p0 }
  0x35   : > { %p1597_p13 = pneg %p1596_p12 }
  0x37   : > { %p1604_p6 = pnand %p1603_p3, %p1597_p13 }
  0x39   : > { %1607 = shalt.err (!%p1604_p6)
}
  0x3a   : > { %1486 = dma.hbm_to_vmem [thread:$0]  (!%p1788_p7), %s2007_s6, 16, %s1792_s25, [#allocation6]  }
  0x3b   : > { %s1843_s21 = sadd.s32 1, %s1676_s18   ;;  %s53_s24 = sadd.s32 1, %s1672_s17 }
  0x3c   : > { %s50_s23 = ssub.s32 %s1676_s18, %s1843_s21  ;;  %p60_p9 = scmp.ne.s32.totalorder %s1672_s17, %s1668_s16 }
  0x3d   : > { %p51_p8 = scmp.eq.s32.totalorder %s50_s23, 0  ;;  %p61_p1 = scmp.eq.s32.totalorder %s1676_s18, 0 }
  0x3e   : > { %p1493_p4 = scmp.lt.s32.totalorder %s1676_s18, 2  ;;  %s331_s26 = sand.u32 1, %s1672_s17  }
  0x3f   : > { %s1854_s27 = scalar_select %p51_p8, %s1672_s17, %s53_s24  }
  0x40   : > { %p62_p5 = por %p61_p1, %p60_p9  ;;  %s1466_s28 = smul.u32 56, %s331_s26 }
  0x41   : > { %s1467_s29 = smul.u32 896, %s1676_s18  ;;  %s1868_s18 = scalar_lea.sflag [#allocation4], %s331_s26 }
  0x42   : > { %p1857_p10 = pnand %p1493_p4, %p62_p5  ;;  %s335_s22 = scalar_lea.vmem [#allocation3], %s1466_s28 }
  0x43   : > { %s1864_s12 = scalar_lea.hbm %s2002_s1, %s1467_s29  ;;  %s342_s13 = sshll.u32 %s335_s22, 4  ;;  %s1866_s13 = int_to_ptr.vmem [resolvable:$true] %s342_s13 }
  0x44   : > { %s1608_s14 = scalar_lea.hbm %s1864_s12, 896  ;;  %p1610_p11 = pneg %p1857_p10 }
  0x45   : > { %p1609_p7 = scmp.ne.s32.totalorder %s1864_s12, %s1608_s14  ;;  %s1613_s23 = scalar_lea.hbm %s2002_s1, 1792 }
  0x46   : > { %p1614_p0 = scmp.lt.u32.totalorder %s1864_s12, %s2002_s1  ;;  %p1615_p2 = scmp.lt.u32.totalorder %s1613_s23, %s1608_s14 }
  0x47   : > { %p1611_p12 = pnand %p1610_p11, %p1609_p7  ;;  %p1617_p6 = scmp.lt.u32.totalorder %s1608_s14, %s1864_s12 }
  0x48   : > { %p1616_p3 = por %p1615_p2, %p1614_p0 }
  0x49   : > { %p1612_p13 = pneg %p1611_p12 }
  0x4a   : > { %p1618_p9 = por %p1617_p6, %p1616_p3 }
  0x4c   : > { %p1619_p8 = pnand %p1618_p9, %p1612_p13 }
  0x4e   : > { %1622 = shalt.err (!%p1619_p8)
}
  0x4f   : > { %s1623_s26 = scalar_lea.vmem %s1866_s13, 896  ;;  %s1682_s28 = smov [#allocation3]  }
  0x50   : > { %p1624_p1 = scmp.ne.s32.totalorder %s1866_s13, %s1623_s26  ;;  %s1628_s11 = sshll.u32 %s1682_s28, 4  ;;  %s1629_s11 = int_to_ptr.vmem [resolvable:$false] %s1628_s11 }
  0x51   : > { %s1630_s22 = scalar_lea.vmem %s1629_s11, 1792  ;;  %p1631_p7 = scmp.lt.s32.totalorder %s1866_s13, %s1629_s11 }
  0x52   : > { %p1626_p4 = pnand %p1624_p1, %p1610_p11  ;;  %p1632_p12 = scmp.lt.s32.totalorder %s1630_s22, %s1623_s26 }
  0x54   : > { %p1627_p5 = pneg %p1626_p4  ;;  %p1633_p0 = por %p1632_p12, %p1631_p7 }
  0x56   : > { %p1634_p2 = pnand %p1633_p0, %p1627_p5 }
  0x58   : > { %1637 = shalt.err (!%p1634_p2)
}
  0x59   : > { %s1683_s14 = smov 128   ;;  %s1684_s15 = smov 8  }
  0x5a   : > { %1490 = dma.hbm_to_vmem [thread:$0]  (!%p1857_p10), %s1864_s12, 896, %s1866_s13, %s1868_s18, %s1683_s14, %s1683_s14, %s1684_s15  }
  0x5b   : > { %p2019_p11 = scmp.ne.s32.totalorder %s2016_s20, 0 }
  0x5c   : > { %s364_s24 = sand.u32 (!%p2019_p11), 1, %s1668_s16   ;;  %p2020_p13 = scmp.ne.s32.totalorder (!%p2019_p11), %s2015_s19, 0 }
  0x5d   : > { %362 = sbr.rel (%p2019_p11) target bundleno = 1604 (0x644), region = 60  ;;  %s365_s29 = scalar_lea.sflag (!%p2019_p11), [#allocation4], %s364_s24 }
  0x5e   : > { %s1468_s23 = smul.u32 (!%p2019_p11), 56, %s364_s24 }
  0x60   : > { %s1899_s25 = scalar_lea.vmem (!%p2019_p11), [#allocation3], %s1468_s23 }
  0x64   : > { %1655 = dma.done.wait (%p2020_p13), %s365_s29, 896  }
  0x65   : > { %1657 = vsyncadd (%p2020_p13), %s365_s29, 4294966400  ;;  %p2021_p3 = scmp.eq.s32.totalorder %s1768_s0, 0 }
  0x67   : > { %1659 = dma.done.wait (%p2021_p3), [#allocation6], 144   ;;  %p2022_p10 = pmov %p2021_p3 }
  0x68   : > { %v1685_v0 = vmov 0.0|0.0   ;;  %vm1686_vm0 = vmmov 0   ;;  %v1687_v1 = vmov 0.0   ;;  %s428_s20 = sld [smem:[#allocation2]]  ;;  %v1257_v2 = vld [vmem:[#allocation5] sm:$0xff]   ;;  %v429_v3 = vld [vmem:[%s1899_s25] sm:$0xff] }
  0x69   : > { %1661 = vsyncadd (%p2022_p10), [#allocation6], 4294967152  ;;  %1419 = vmatprep.subr.bf16.mxu0 %v1685_v0  ;;  %1337 = vmatprep.mubr.msk.f32.mxu0 %vm1686_vm0, %v1687_v1  ;;  %v430_v5 = vld [vmem:[%s1899_s25 + $0x8] sm:$0xff]  ;;  %vm436_vm1 = vcmp.gt.f32.partialorder %v429_v3, 0.0  ;;  %vm469_vm2 = vcmask 130048   ;;  %v431_v8 = vld [vmem:[%s1899_s25 + $0x10] sm:$0xff] }
  0x6a   : > { %1421 = vmatpush3.bf16.msra.mxu0 %v1257_v2  ;;  %vm437_vm3 = vcmp.gt.f32.partialorder %v430_v5, 0.0  ;;  %vm438_vm4 = vcmp.gt.f32.partialorder %v431_v8, 0.0  ;;  %v432_v12 = vld [vmem:[%s1899_s25 + $0x18] sm:$0xff]  ;;  %v433_v15 = vld [vmem:[%s1899_s25 + $0x20] sm:$0xff]  ;;  %v434_v18 = vld [vmem:[%s1899_s25 + $0x28] sm:$0xff]  ;;  %vm595_vm9 = vcmask 457728  }
  0x6b   : > { %vm439_vm5 = vcmp.gt.f32.partialorder %v432_v12, 0.0  ;;  %vm440_vm6 = vcmp.gt.f32.partialorder %v433_v15, 0.0  ;;  %vm441_vm7 = vcmp.gt.f32.partialorder %v434_v18, 0.0  ;;  %v435_v21 = vld [vmem:[%s1899_s25 + $0x30] sm:$0xff]  ;;  %v1261_v25 = vld [vmem:[%s2005_s4] sm:$0xff]   ;;  %vm692_vm10 = vcmask 261120  }
  0x6c   : > { %vm442_vm8 = vcmp.gt.f32.partialorder %v435_v21, 0.0  ;;  %v1262_v26 = vunpack.c.l.bf16 %v1261_v25  ;;  %v1232_v29 = vld [vmem:[%s2004_s3] ss:$0 sm:$0xff]  ;;  %v1263_v52 = vunpack.c.h.bf16 %v1261_v25  ;;  %v1288_v54 = vld [vmem:[%s2006_s5 + $0x8] sm:$0xff]   ;;  %v1242_v58 = vld [vmem:[#allocation7] ss:$0 sm:$0xff] }
  0x6d   : > { %v1265_v53 = vld [vmem:[%s2006_s5] sm:$0xff]   ;;  %p418_p6 = scmp.lt.s32.totalorder %s1768_s0, 1  ;;  %s1688_s12 = smov 96   ;;  %vm984_vm11 = vcmask 1040384   ;;  %vm1114_vm12 = vcmask 64512   ;;  %vm1117_vm13 = vcmask 57344  }
  0x6e   : > { %v443_v4 = vstv %s428_s20  ;;  %1372 = vmatprep.mubr.msk.f32.mxu1 %vm595_vm9, %v1262_v26  ;;  %v1273_v57 = vld [vmem:[%s2008_s7] sm:$0xff]   ;;  %s1689_s13 = smov 32   ;;  %s1690_s28 = smov 120  }
  0x6f   : > { %v444_v6 = vmul.f32 %v443_v4, %v429_v3  ;;  %v445_v7 = vmul.f32 %v443_v4, %v430_v5  ;;  %v446_v11 = vmul.f32 %v443_v4, %v431_v8  ;;  %v447_v14 = vmul.f32 %v443_v4, %v432_v12  ;;  %s2028_s0 = smov (!%p418_p6, %s1768_s0), 1 }
  0x70   : > { %v448_v17 = vmul.f32 %v443_v4, %v433_v15  ;;  %v449_v20 = vmul.f32 %v443_v4, %v434_v18  ;;  %v450_v23 = vmul.f32 %v443_v4, %v435_v21  ;;  %v1289_v4 = vld [vmem:[%s2008_s7 + $0x8] sm:$0xff]   ;;  %s1255_s25 = sshll.u32 %s2028_s0, 4  ;;  %s1469_s11 = smul.u32 48, %s2028_s0 }
  0x71   : > { %v451_v9 = vsel %vm436_vm1, %v429_v3, %v444_v6  ;;  %v452_v10 = vsel %vm437_vm3, %v430_v5, %v445_v7  ;;  %v453_v13 = vsel %vm438_vm4, %v431_v8, %v446_v11  ;;  %v454_v16 = vsel %vm439_vm5, %v432_v12, %v447_v14  ;;  %v1281_v6 = vld [vmem:[%s2010_s9] sm:$0xff]   ;;  %s422_s30 = scalar_lea.vmem %s2009_s8, %s1255_s25 }
  0x72   : > { %1338 = vmatmul.mubr.msk.f32.vlgmr.msra.gmra.mrb[0].mxu0 %vm469_vm2, %v451_v9  ;;  %v455_v19 = vsel %vm440_vm6, %v433_v15, %v448_v17  ;;  %v456_v22 = vsel %vm441_vm7, %v434_v18, %v449_v20  ;;  %v457_v24 = vsel %vm442_vm8, %v435_v21, %v450_v23  ;;  %1451 = vmatprep.subr.bf16.mxu0 %v1281_v6  ;;  %v889_v8 = vld [vmem:[%s422_s30] sm:$0xff]  ;;  %v890_v9 = vld [vmem:[%s422_s30 + $0x8] sm:$0xff]  ;;  %s427_s15 = scalar_lea.vmem %s2011_s10, %s1469_s11 }
  0x73   : > { %1340 = vmatprep.mubr.msk.f32.mxu0 %vm1686_vm0, %v1687_v1  ;;  %1453 = vmatpush3.bf16.msra.mxu0 %v1281_v6  ;;  %v1290_v17 = vld [vmem:[%s2010_s9 + $0x8] sm:$0xff]  }
  0x74   : > { %1003 = vrot.lane.b32.xlu1 %v889_v8, %s1689_s13  ;;  %1455 = vmatprep.subr.bf16.mxu0 %v1290_v17 }
  0x76   : > { %1341 = vmatmul.mubr.msk.f32.gmra.mrb[2].mxu0 %vm469_vm2, %v452_v10 }
  0x77   : > { %1343 = vmatprep.mubr.msk.f32.mxu0 %vm1686_vm0, %v1687_v1  ;;  %1457 = vmatpush3.bf16.msra.mxu0 %v1290_v17 }
  0x78   : > { %1005 = vrot.lane.b32.xlu1 %v890_v9, %s1689_s13 }
  0x7a   : > { %1344 = vmatmul.mubr.msk.f32.gmra.mrb[4].mxu0 %vm469_vm2, %v453_v13 }
  0x7b   : > { %1346 = vmatprep.mubr.msk.f32.mxu0 %vm1686_vm0, %v1687_v1 }
  0x7e   : > { %1347 = vmatmul.mubr.msk.f32.gmra.mrb[6].mxu0 %vm469_vm2, %v454_v16 }
  0x7f   : > { %1349 = vmatprep.mubr.msk.f32.mxu0 %vm1686_vm0, %v1687_v1 }
  0x82   : > { %1350 = vmatmul.mubr.msk.f32.gmra.mrb[8].mxu0 %vm469_vm2, %v455_v19 }
  0x83   : > { %1352 = vmatprep.mubr.msk.f32.mxu0 %vm1686_vm0, %v1687_v1 }
  0x86   : > { %1353 = vmatmul.mubr.msk.f32.gmra.mrb[10].mxu0 %vm469_vm2, %v456_v22 }
  0x87   : > { %1355 = vmatprep.mubr.msk.f32.mxu0 %vm1686_vm0, %v1687_v1 }
  0x8a   : > { %1356 = vmatmul.mubr.msk.f32.gmra.mrb[12].mxu0 %vm469_vm2, %v457_v24 }
  0xe6   : > { %v1004_v18 = vpop.permute.xlu1 %1003 }
  0xea   : > { %v1006_v20 = vpop.permute.xlu1 %1005 }
 0x145   : > { %v557_v27 = vpop.f32.mrb[0].mxu0 }
 0x146   : > { %v1339_v28 = vpop.f32.mrb[1].mxu0  ;;  %v558_v31 = vadd.f32 %v1232_v29, %v557_v27 }
 0x149   : > { %v562_v30 = vpop.f32.mrb[2].mxu0 }
 0x14a   : > { %v563_v32 = vadd.f32 %v1232_v29, %v562_v30  ;;  %v1342_v33 = vpop.f32.mrb[3].mxu0 }
 0x14c   : > { %v1422_v34 = vpack.c.bf16 %v563_v32, %v558_v31 }
 0x14d   : > { %v567_v35 = vpop.f32.mrb[4].mxu0 }
 0x14e   : > { %v1345_v36 = vpop.f32.mrb[5].mxu0  ;;  %1423 = vmatprep.subr.bf16.mxu1 %v1422_v34  ;;  %v568_v38 = vadd.f32 %v1232_v29, %v567_v35 }
 0x14f   : > { %1425 = vmatpush3.bf16.msra.mxu1 %v1422_v34 }
 0x151   : > { %v572_v37 = vpop.f32.mrb[6].mxu0 }
 0x152   : > { %v573_v39 = vadd.f32 %v1232_v29, %v572_v37  ;;  %v1348_v40 = vpop.f32.mrb[7].mxu0 }
 0x154   : > { %v1426_v41 = vpack.c.bf16 %v573_v39, %v568_v38 }
 0x155   : > { %v577_v42 = vpop.f32.mrb[8].mxu0 }
 0x156   : > { %v1351_v43 = vpop.f32.mrb[9].mxu0  ;;  %1427 = vmatprep.subr.bf16.mxu1 %v1426_v41  ;;  %v578_v45 = vadd.f32 %v1232_v29, %v577_v42 }
 0x157   : > { %1429 = vmatpush3.bf16.msra.mxu1 %v1426_v41 }
 0x159   : > { %v582_v44 = vpop.f32.mrb[10].mxu0 }
 0x15a   : > { %v583_v46 = vadd.f32 %v1232_v29, %v582_v44  ;;  %v1354_v47 = vpop.f32.mrb[11].mxu0 }
 0x15c   : > { %v1430_v48 = vpack.c.bf16 %v583_v46, %v578_v45 }
 0x15d   : > { %v587_v49 = vpop.f32.mrb[12].mxu0 }
 0x15e   : > { %v588_v50 = vadd.f32 %v1232_v29, %v587_v49  ;;  %1431 = vmatprep.subr.bf16.mxu1 %v1430_v48  ;;  %v1357_v51 = vpop.f32.mrb[13].mxu0 }
 0x15f   : > { %1433 = vmatpush3.bf16.msra.mxu1 %v1430_v48 }
 0x160   : > { %1370 = vmatprep.subr.mxu1 %v588_v50 }
 0x163   : > { %1371 = vmatpush3.msra.mxu1 %v588_v50 }
 0x164   : > { %1373 = vmatmul.mubr.msk.f32.vlgmr.msra.gmra.mrb[0].mxu1 %vm595_vm9, %v1263_v52  ;;  %1435 = vmatprep.subr.bf16.mxu1 %v1265_v53 }
 0x165   : > { %1437 = vmatpush3.bf16.msra.mxu1 %v1265_v53 }
 0x166   : > { %1439 = vmatprep.subr.bf16.mxu1 %v1288_v54 }
 0x169   : > { %1441 = vmatpush3.bf16.msra.mxu1 %v1288_v54 }
 0x16a   : > { %1443 = vmatprep.subr.bf16.mxu1 %v1273_v57 }
 0x237   : > { %v1374_v55 = vpop.f32.mrb[0].mxu1 }
 0x238   : > { %v668_v56 = vpop.f32.mrb[1].mxu1 }
 0x239   : > { %1383 = vmatprep.mubr.msk.f32.mxu1 %vm692_vm10, %v668_v56 }
 0x23a   : > { %1384 = vmatmul.mubr.msk.f32.vlgmr.msra.gmra.mrb[2].mxu1 %vm692_vm10, %v1374_v55 }
 0x23b   : > { %1445 = vmatpush3.bf16.msra.mxu1 %v1273_v57 }
 0x23c   : > { %1447 = vmatprep.subr.bf16.mxu1 %v1289_v4 }
 0x23f   : > { %1449 = vmatpush3.bf16.msra.mxu1 %v1289_v4 }
 0x240   : > { %1459 = vmatprep.subr.bf16.mxu1 %v1281_v6 }
 0x30d   : > { %v1385_v59 = vpop.f32.mrb[2].mxu1 }
 0x30e   : > { %v771_v60 = vadd.f32 %v1385_v59, %v1242_v58  ;;  %v765_v61 = vpop.f32.mrb[3].mxu1 }
 0x30f   : > { %v766_v62 = vadd.f32 %v1242_v58, %v765_v61 }
 0x310   : > { %v1246_v63 = vmul.f32 -1.442695, %v771_v60 }
 0x311   : > { %v1245_v0 = vmul.f32 -1.442695, %v766_v62 }
 0x312   : > { %1540 = vpow2.f32 %v1246_v63 }
 0x313   : > { %1542 = vpow2.f32 %v1245_v0 }
 0x31c   : > { %v1541_v1 = vpop.eup %1540 }
 0x31d   : > { %v1543_v2 = vpop.eup %1542  ;;  %v783_v5 = vadd.f32 1.0, %v1541_v1 }
 0x31e   : > { %v782_v3 = vadd.f32 1.0, %v1543_v2 }
 0x320   : > { %1544 = vrcp.f32 %v782_v3 }
 0x321   : > { %1546 = vrcp.f32 %v783_v5 }
 0x322   : > { %1548 = vtanh.f32 %v766_v62 }
 0x323   : > { %1550 = vtanh.f32 %v771_v60 }
 0x32a   : > { %v1545_v7 = vpop.eup %1544 }
 0x32b   : > { %790 = vrot.lane.b32.xlu0 %v1545_v7, %s1688_s12  ;;  %v1547_v10 = vpop.eup %1546 }
 0x32c   : > { %v1549_v11 = vpop.eup %1548 }
 0x32d   : > { %v1551_v14 = vpop.eup %1550 }
 0x32f   : > { %792 = vrot.lane.b32.xlu0 %v1547_v10, %s1688_s12 }
 0x39d   : > { %v791_v12 = vpop.permute.xlu0 %790 }
 0x39e   : > { %v796_v13 = vmul.f32 %v1549_v11, %v791_v12 }
 0x3a0   : > { %1394 = vmatprep.mubr.msk.f32.mxu1 %vm692_vm10, %v796_v13 }
 0x3a1   : > { %v793_v15 = vpop.permute.xlu0 %792 }
 0x3a2   : > { %v797_v16 = vmul.f32 %v1551_v14, %v793_v15 }
 0x3a4   : > { %1395 = vmatmul.mubr.msk.f32.vlgmr.msra.gmra.mrb[4].mxu1 %vm692_vm10, %v797_v16 }
 0x3a5   : > { %1461 = vmatpush3.bf16.msra.mxu1 %v1281_v6 }
 0x3a6   : > { %1463 = vmatprep.subr.bf16.mxu1 %v1290_v17 }
 0x3a9   : > { %1465 = vmatpush3.bf16.msra.mxu1 %v1290_v17 }
 0x477   : > { %v1396_v19 = vpop.f32.mrb[4].mxu1 }
 0x478   : > { %v888_v21 = vmax.f32 %v1396_v19, 0.0  ;;  %v878_v22 = vpop.f32.mrb[5].mxu1 }
 0x479   : > { %v887_v23 = vmax.f32 %v878_v22, 0.0 }
 0x47a   : > { %v1010_v24 = vmul.f32 %v1006_v20, %v888_v21  ;;  %v900_v27 = vmul.f32 %v890_v9, %v888_v21 }
 0x47b   : > { %v899_v25 = vmul.f32 %v889_v8, %v887_v23  ;;  %v1009_v26 = vmul.f32 %v1004_v18, %v887_v23 }
 0x47c   : > { %1015 = vrot.lane.b32.xlu1 %v1010_v24, %s1688_s12 }
 0x47d   : > { %1013 = vrot.lane.b32.xlu0 %v1009_v26, %s1688_s12  ;;  %1405 = vmatprep.mubr.msk.f32.mxu0 %vm692_vm10, %v899_v25 }
 0x47e   : > { %1406 = vmatmul.mubr.msk.f32.vlgmr.msra.gmra.mrb[14].mxu0 %vm692_vm10, %v900_v27 }
 0x4ee   : > { %v1016_v29 = vpop.permute.xlu1 %1015 }
 0x4ef   : > { %v1014_v28 = vpop.permute.xlu0 %1013 }
 0x4f0   : > { %1416 = vmatprep.mubr.msk.f32.mxu1 %vm692_vm10, %v1014_v28 }
 0x4f1   : > { %1417 = vmatmul.mubr.msk.f32.vlgmr.msra.gmra.mrb[6].mxu1 %vm692_vm10, %v1016_v29 }
 0x551   : > { %v1407_v30 = vpop.f32.mrb[14].mxu0 }
 0x552   : > { %v986_v31 = vrot.slane %v1407_v30, 7  ;;  %v973_v32 = vpop.f32.mrb[15].mxu0 }
 0x553   : > { %v985_v33 = vrot.slane %v973_v32, 7 }
 0x555   : > { %988 = vrot.lane.b32.xlu0 %v985_v33, %s1690_s28  ;;  %v987_v34 = vsel %vm984_vm11, %v985_v33, %v986_v31 }
 0x559   : > { %990 = vrot.lane.b32.xlu0 %v987_v34, %s1690_s28 }
 0x55d   : > { %992 = vrot.lane.b32.xlu0 %v986_v31, %s1690_s28 }
 0x5c4   : > { %v1418_v35 = vpop.f32.mrb[6].mxu1 }
 0x5c5   : > { %v1099_v36 = vrot.slane %v1418_v35, 7  ;;  %v1087_v37 = vpop.f32.mrb[7].mxu1 }
 0x5c6   : > { %v1098_v38 = vrot.slane %v1087_v37, 7 }
 0x5c7   : > { %v989_v39 = vpop.permute.xlu0 %988 }
 0x5c8   : > { %v997_v40 = vsel %vm984_vm11, 0.0, %v989_v39  ;;  %1101 = vrot.lane.b32.xlu1 %v1098_v38, %s1690_s28  ;;  %v1100_v41 = vsel %vm984_vm11, %v1098_v38, %v1099_v36 }
 0x5c9   : > { %v998_v42 = vadd.f32 %v997_v40, %v973_v32 }
 0x5cb   : > { %1115 = vst.msk [vmem:[%s427_s15] sm:$0xff] %vm1114_vm12, %v998_v42  ;;  %v991_v43 = vpop.permute.xlu0 %990 }
 0x5cc   : > { %v999_v44 = vadd.f32 %v1407_v30, %v991_v43  ;;  %1103 = vrot.lane.b32.xlu1 %v1100_v41, %s1690_s28 }
 0x5ce   : > { %1116 = vst.msk [vmem:[%s427_s15 + $0x8] sm:$0xff] %vm1114_vm12, %v999_v44 }
 0x5cf   : > { %v993_v45 = vpop.permute.xlu0 %992 }
 0x5d0   : > { %1118 = vst.msk [vmem:[%s427_s15 + $0x10] sm:$0x1] %vm1117_vm13, %v993_v45  ;;  %1105 = vrot.lane.b32.xlu1 %v1099_v36, %s1690_s28 }
 0x63a   : > { %v1102_v46 = vpop.permute.xlu1 %1101 }
 0x63b   : > { %v1110_v47 = vsel %vm984_vm11, 0.0, %v1102_v46 }
 0x63c   : > { %v1111_v48 = vadd.f32 %v1110_v47, %v1087_v37 }
 0x63e   : > { %1119 = vst.msk [vmem:[%s427_s15 + $0x18] sm:$0xff] %vm1114_vm12, %v1111_v48  ;;  %v1104_v49 = vpop.permute.xlu1 %1103 }
 0x63f   : > { %v1112_v50 = vadd.f32 %v1418_v35, %v1104_v49 }
 0x641   : > { %1120 = vst.msk [vmem:[%s427_s15 + $0x20] sm:$0xff] %vm1114_vm12, %v1112_v50 }
 0x642   : > { %v1106_v51 = vpop.permute.xlu1 %1105 }
 0x643   : > { %1121 = vst.msk [vmem:[%s427_s15 + $0x28] sm:$0x1] %vm1117_vm13, %v1106_v51 }
 0x644 PF: > { %p22_p9 = scmp.ge.s32.totalorder %s1843_s21, 4   ;;  %s2023_s15 = smov %s1668_s16 }
 0x645   : > { %s2024_s16 = smov %s1672_s17  ;;  %s2025_s17 = smov %s1854_s27 }
 0x646   : > { %s2026_s18 = smov %s1843_s21  ;;  %24 = sbr.rel (!%p22_p9) target bundleno = 6 (0x6), region = 111 }
 0x64d   :  { %1143 = vsyncpa [#allocation4], 1 }
 0x64e   :  { %1145 = vsyncpa [#allocation4 + $0x1], 1 }
 0x64f   :  { %1146 = vsyncpa [#allocation6], 1 }

</bundles_post_ra>
